<compile_context>
chip_gen: v7x
topology: tpu7x:2x2x1
jax: 0.10.0
libtpu: 0.0.40
codegen_flags: <defaults>
</compile_context>

<pallas_src>
import math

import jax
import jax.numpy as jnp
from jax.experimental import pallas as pl
from jax.experimental.pallas import tpu as pltpu

LN_EPS = 1e-5  # torch.nn.LayerNorm default


# ----------------------------- plain-JAX glue ---------------------------------------

def sinusoidal_pos_emb(timestep, dim, num_steps, rescale_steps=4000.0):
    """SinusoidalPosEmb.forward: scalar-per-batch sin/cos table, shape [B, dim]."""
    t = timestep.astype(jnp.float32) / float(num_steps) * float(rescale_steps)
    half_dim = dim // 2
    freq = jnp.exp(
        jnp.arange(half_dim, dtype=jnp.float32) * -(math.log(10000.0) / (half_dim - 1))
    )
    ang = t[:, None] * freq[None, :]                                  # [B, half_dim]
    return jnp.concatenate([jnp.sin(ang), jnp.cos(ang)], axis=-1)     # [B, dim]


# ------------------------------ Pallas kernel ----------------------------------------

def _ada_layernorm_kernel(x_ref, temb_ref, w_ref, b_ref, o_ref):
    D = x_ref.shape[-1]

    # Conditioning: e = SiLU(temb) @ W^T + b  -> [B, 2D]  (f32 accumulation on MXU).
    # Tiny matmul; recomputed per seq tile so the grid axis stays fully parallel.
    temb = temb_ref[...]
    h = temb * jax.nn.sigmoid(temb)                                   # SiLU (VPU + EUP)
    e = jax.lax.dot_general(
        h, w_ref[...], (((1,), (1,)), ((), ())),
        preferred_element_type=jnp.float32,
    ) + b_ref[...]

    scale = e[:, None, :D]                                            # [B, 1, D] (chunk: scale first)
    shift = e[:, None, D:]                                            # [B, 1, D]

    # LayerNorm over the last dim (no affine), then modulation.
    x = x_ref[...]
    m = jnp.mean(x, axis=-1, keepdims=True)
    v = jnp.mean((x - m) ** 2, axis=-1, keepdims=True)
    xn = (x - m) * jax.lax.rsqrt(v + LN_EPS)
    o_ref[...] = (xn * (1.0 + scale) + shift).astype(o_ref.dtype)


def ada_layernorm_pallas(x, temb, w, b, *, tile_s=None):
    """x: [B, S, D] f32, temb: [B, D] f32, w: [2D, D] (PyTorch layout), b: [1, 2D]."""
    B, S, D = x.shape
    if tile_s is None:
        tile_s = S if S <= 512 else 512
    assert S % tile_s == 0 and (tile_s == S or tile_s % 8 == 0)
    grid = (S // tile_s,)

    return pl.pallas_call(
        _ada_layernorm_kernel,
        out_shape=jax.ShapeDtypeStruct((B, S, D), x.dtype),
        grid_spec=pltpu.PrefetchScalarGridSpec(
            num_scalar_prefetch=0,
            grid=grid,
            in_specs=[
                pl.BlockSpec((B, tile_s, D), lambda s: (0, s, 0)),    # x seq tile
                pl.BlockSpec((B, D), lambda s: (0, 0)),               # temb (same block each step)
                pl.BlockSpec((2 * D, D), lambda s: (0, 0)),           # Linear weight
                pl.BlockSpec((1, 2 * D), lambda s: (0, 0)),           # Linear bias
            ],
            out_specs=pl.BlockSpec((B, tile_s, D), lambda s: (0, s, 0)),
        ),
        compiler_params=pltpu.CompilerParams(
            dimension_semantics=("parallel",),
        ),
    )(x, temb, w, b)


# ------------------------------ pure-JAX reference -----------------------------------

def ada_layernorm_reference(x, temb, w, b):
    h = temb * jax.nn.sigmoid(temb)
    e = h @ w.T + b                                                   # [B, 2D]
    D = x.shape[-1]
    scale, shift = e[:, None, :D], e[:, None, D:]
    m = jnp.mean(x, axis=-1, keepdims=True)
    v = jnp.mean((x - m) ** 2, axis=-1, keepdims=True)
    xn = (x - m) / jnp.sqrt(v + LN_EPS)
    return xn * (1.0 + scale) + shift


# ------------------------------------ main --------------------------------------------

if __name__ == "__main__":
    n_embd, max_timestep = 128, 100                                   # lane-dense hidden dim
    B, S = 4, 64                                                      # small shapes; grid = (4,) with tile_s=16

    key = jax.random.PRNGKey(0)
    kx, kt, kw, kb = jax.random.split(key, 4)
    x = jax.random.normal(kx, (B, S, n_embd), jnp.float32)
    timestep = jax.random.randint(kt, (B,), 0, max_timestep)
    w = 0.02 * jax.random.normal(kw, (2 * n_embd, n_embd), jnp.float32)   # Linear(D, 2D).weight
    b = 0.02 * jax.random.normal(kb, (1, 2 * n_embd), jnp.float32)        # Linear(D, 2D).bias

    temb = sinusoidal_pos_emb(timestep, n_embd, max_timestep)             # SinusoidalPosEmb

    out = ada_layernorm_pallas(x, temb, w, b, tile_s=16)
    out = jax.block_until_ready(out)
    assert out.shape == (B, S, n_embd) and out.dtype == jnp.float32

    ref = ada_layernorm_reference(x, temb, w, b)
    assert float(jnp.max(jnp.abs(out - ref))) < 2e-3
    print("KERNEL_OK")
</pallas_src>

<mosaic_0001>
module attributes {stable_mosaic.version = 11 : i64} {
  func.func @_ada_layernorm_kernel(%arg0: i32, %arg1: memref<4x16x128xf32, #tpu.memory_space<vmem>>, %arg2: memref<4x128xf32, #tpu.memory_space<vmem>>, %arg3: memref<256x128xf32, #tpu.memory_space<vmem>>, %arg4: memref<1x256xf32, #tpu.memory_space<vmem>>, %arg5: memref<4x16x128xf32, #tpu.memory_space<vmem>>) attributes {dimension_semantics = [#tpu.dimension_semantics<parallel>], iteration_bounds = array<i64: 4>, scalar_prefetch = 0 : i64, scratch_operands = 0 : i64, tpu.core_type = #tpu.core_type<tc>, window_params = [{transform_indices = @transform_0, window_bounds = array<i64: 4, 16, 128>}, {pipeline_mode = #tpu.pipeline_mode<synchronous>, transform_indices = @transform_1, window_bounds = array<i64: 4, 128>}, {pipeline_mode = #tpu.pipeline_mode<synchronous>, transform_indices = @transform_2, window_bounds = array<i64: 256, 128>}, {pipeline_mode = #tpu.pipeline_mode<synchronous>, transform_indices = @transform_3, window_bounds = array<i64: 1, 256>}, {transform_indices = @transform_4, window_bounds = array<i64: 4, 16, 128>}]} {
    %c0 = arith.constant 0 : index
    %c0_0 = arith.constant 0 : index
    %0 = vector.load %arg2[%c0, %c0_0] : memref<4x128xf32, #tpu.memory_space<vmem>>, vector<4x128xf32>
    %1 = arith.negf %0 : vector<4x128xf32>
    %2 = math.exp %1 : vector<4x128xf32>
    %cst = arith.constant 1.000000e+00 : f32
    %3 = vector.broadcast %cst : f32 to vector<4x128xf32>
    %4 = arith.addf %3, %2 : vector<4x128xf32>
    %5 = arith.divf %3, %4 : vector<4x128xf32>
    %6 = arith.mulf %0, %5 : vector<4x128xf32>
    %c0_1 = arith.constant 0 : index
    %c0_2 = arith.constant 0 : index
    %7 = vector.load %arg3[%c0_1, %c0_2] : memref<256x128xf32, #tpu.memory_space<vmem>>, vector<256x128xf32>
    %cst_3 = arith.constant dense<0.000000e+00> : vector<4x256xf32>
    %8 = tpu.matmul %6, %7, %cst_3 {dimension_numbers = #tpu.dot_dimension_numbers<[1], [1], [0], [0], [0, 0, 1, 0], [], []>} : vector<4x128xf32>, vector<256x128xf32>, vector<4x256xf32> -> vector<4x256xf32>
    %c0_4 = arith.constant 0 : index
    %c0_5 = arith.constant 0 : index
    %9 = vector.load %arg4[%c0_4, %c0_5] : memref<1x256xf32, #tpu.memory_space<vmem>>, vector<1x256xf32>
    %10 = vector.broadcast %9 : vector<1x256xf32> to vector<4x256xf32>
    %11 = arith.addf %8, %10 : vector<4x256xf32>
    %12 = vector.extract_strided_slice %11 {offsets = [0, 0], sizes = [4, 128], strides = [1, 1]} : vector<4x256xf32> to vector<4x128xf32>
    %13 = vector.shape_cast %12 : vector<4x128xf32> to vector<4x1x128xf32>
    %14 = vector.extract_strided_slice %11 {offsets = [0, 128], sizes = [4, 128], strides = [1, 1]} : vector<4x256xf32> to vector<4x128xf32>
    %15 = vector.shape_cast %14 : vector<4x128xf32> to vector<4x1x128xf32>
    %c0_6 = arith.constant 0 : index
    %c0_7 = arith.constant 0 : index
    %c0_8 = arith.constant 0 : index
    %16 = vector.load %arg1[%c0_6, %c0_7, %c0_8] : memref<4x16x128xf32, #tpu.memory_space<vmem>>, vector<4x16x128xf32>
    %cst_9 = arith.constant dense<0.000000e+00> : vector<4x16xf32>
    %17 = vector.multi_reduction <add>, %16, %cst_9 [2] : vector<4x16x128xf32> to vector<4x16xf32>
    %18 = vector.shape_cast %17 : vector<4x16xf32> to vector<4x16x1xf32>
    %cst_10 = arith.constant 1.280000e+02 : f32
    %19 = vector.broadcast %cst_10 : f32 to vector<4x16x1xf32>
    %20 = arith.divf %18, %19 : vector<4x16x1xf32>
    %21 = vector.broadcast %20 : vector<4x16x1xf32> to vector<4x16x128xf32>
    %22 = arith.subf %16, %21 : vector<4x16x128xf32>
    %23 = arith.mulf %22, %22 : vector<4x16x128xf32>
    %cst_11 = arith.constant dense<0.000000e+00> : vector<4x16xf32>
    %24 = vector.multi_reduction <add>, %23, %cst_11 [2] : vector<4x16x128xf32> to vector<4x16xf32>
    %25 = vector.shape_cast %24 : vector<4x16xf32> to vector<4x16x1xf32>
    %cst_12 = arith.constant 1.280000e+02 : f32
    %26 = vector.broadcast %cst_12 : f32 to vector<4x16x1xf32>
    %27 = arith.divf %25, %26 : vector<4x16x1xf32>
    %28 = vector.broadcast %20 : vector<4x16x1xf32> to vector<4x16x128xf32>
    %29 = arith.subf %16, %28 : vector<4x16x128xf32>
    %cst_13 = arith.constant 9.99999974E-6 : f32
    %30 = vector.broadcast %cst_13 : f32 to vector<4x16x1xf32>
    %31 = arith.addf %27, %30 : vector<4x16x1xf32>
    %32 = math.rsqrt %31 : vector<4x16x1xf32>
    %33 = vector.broadcast %32 : vector<4x16x1xf32> to vector<4x16x128xf32>
    %34 = arith.mulf %29, %33 : vector<4x16x128xf32>
    %cst_14 = arith.constant 1.000000e+00 : f32
    %35 = vector.broadcast %cst_14 : f32 to vector<4x1x128xf32>
    %36 = arith.addf %35, %13 : vector<4x1x128xf32>
    %37 = vector.broadcast %36 : vector<4x1x128xf32> to vector<4x16x128xf32>
    %38 = arith.mulf %34, %37 : vector<4x16x128xf32>
    %39 = vector.broadcast %15 : vector<4x1x128xf32> to vector<4x16x128xf32>
    %40 = arith.addf %38, %39 : vector<4x16x128xf32>
    %c0_15 = arith.constant 0 : index
    %c0_16 = arith.constant 0 : index
    %c0_17 = arith.constant 0 : index
    %41 = vector.load %arg5[%c0_15, %c0_16, %c0_17] : memref<4x16x128xf32, #tpu.memory_space<vmem>>, vector<4x16x128xf32>
    tpu.vector_store %arg5[%c0_15, %c0_16, %c0_17], %40 {strides = array<i32>} : memref<4x16x128xf32, #tpu.memory_space<vmem>>, vector<4x16x128xf32>,
    return
  }
  func.func @transform_0(%arg0: i32) -> (i32, i32, i32) {
    %c0_i32 = arith.constant 0 : i32
    %c0_i32_0 = arith.constant 0 : i32
    %c0_i32_1 = arith.constant 0 : i32
    return %c0_i32, %arg0, %c0_i32_0 : i32, i32, i32
  }
  func.func @transform_1(%arg0: i32) -> (i32, i32) {
    %c0_i32 = arith.constant 0 : i32
    %c0_i32_0 = arith.constant 0 : i32
    %c0_i32_1 = arith.constant 0 : i32
    return %c0_i32, %c0_i32_0 : i32, i32
  }
  func.func @transform_2(%arg0: i32) -> (i32, i32) {
    %c0_i32 = arith.constant 0 : i32
    %c0_i32_0 = arith.constant 0 : i32
    %c0_i32_1 = arith.constant 0 : i32
    return %c0_i32, %c0_i32_0 : i32, i32
  }
  func.func @transform_3(%arg0: i32) -> (i32, i32) {
    %c0_i32 = arith.constant 0 : i32
    %c0_i32_0 = arith.constant 0 : i32
    %c0_i32_1 = arith.constant 0 : i32
    return %c0_i32, %c0_i32_0 : i32, i32
  }
  func.func @transform_4(%arg0: i32) -> (i32, i32, i32) {
    %c0_i32 = arith.constant 0 : i32
    %c0_i32_0 = arith.constant 0 : i32
    %c0_i32_1 = arith.constant 0 : i32
    return %c0_i32, %arg0, %c0_i32_0 : i32, i32, i32
  }
}

</mosaic_0001>

<bundles_post_ra>
// kernel: tpu_custom_call.1
= control target key start
LH: loop header
LB: loop body
LE: loop exit
PB: predicated region body
PF: predicated region fallthrough
CT: control target
= control target key end

     0   :  { %9 = vsyncpa [#allocation3], 0  ;;  %s1399_s0 = inlined_call_operand.hbm [shape: f32[4,64,128], index: 0, kind: input, shape index: {}]   ;;  %s1400_s1 = inlined_call_operand.hbm [shape: f32[4,128], index: 1, kind: input, shape index: {}]   ;;  %s1401_s2 = inlined_call_operand.hbm [shape: f32[256,128], index: 2, kind: input, shape index: {}]   ;;  %s1402_s3 = inlined_call_operand.vmem [shape: f32[1,256], index: 3, kind: input, shape index: {}]   ;;  %s1403_s4 = inlined_call_operand.hbm [shape: f32[4,64,128], index: 4, kind: output, shape index: {}]  }
   0x1   :  { %11 = vsyncpa [#allocation3 + $0x1], 0 }
   0x2   :  { %12 = vsyncpa [#allocation6], 0 }
   0x3   :  { %13 = vsyncpa [#allocation4], 0 }
   0x4   :  { %15 = vsyncpa [#allocation4 + $0x1], 0  ;;  %s1094_s15 = smov 0   ;;  %s1096_s16 = smov 0  }
   0x5   :  { %s1098_s17 = smov 0   ;;  %s1100_s18 = smov 0  }
   0x6 LB: > { %s1115_s19 = sadd.s32 4294967295, %s1049_s18   ;;  %s751_s20 = sadd.s32 4294967294, %s1049_s18   ;;  %s1049_s18 = sphi %s1100_s18, %s1425_s18   ;;  %s1045_s17 = sphi %s1098_s17, %s1424_s17   ;;  %s1041_s16 = sphi %s1096_s16, %s1423_s16   ;;  %s1037_s15 = sphi %s1094_s15, %s1422_s15  }
   0x7   : > { %s1119_s21 = sadd.s32 1, %s1049_s18   ;;  %s28_s22 = sadd.s32 1, %s1045_s17 }
   0x8   : > { %s25_s23 = ssub.s32 %s1049_s18, %s1119_s21  ;;  %p35_p0 = scmp.ne.s32.totalorder %s1045_s17, %s1041_s16 }
   0x9   : > { %p26_p1 = scmp.eq.s32.totalorder %s25_s23, 0  ;;  %p36_p2 = scmp.eq.s32.totalorder %s1049_s18, 0 }
   0xa   : > { %p41_p3 = scmp.ne.s32.totalorder %s1041_s16, %s1037_s15  ;;  %p1404_p4 = scmp.eq.s32.totalorder %s1115_s19, 0 }
   0xb   : > { %s1131_s24 = scalar_select %p26_p1, %s1045_s17, %s28_s22  }
   0xc   : > { %p1133_p5 = por %p36_p2, %p35_p0  ;;  %p1139_p6 = por %p1404_p4, %p41_p3 }
   0xd   : > { %p128_p7 = scmp.eq.s32.totalorder %s1115_s19, 3  ;;  %p134_p8 = scmp.eq.s32.totalorder %s751_s20, 3 }
   0xe   : > { %s1409_s25 = scalar_select %p1133_p5, 1, 0 }
   0xf   : > { %s1410_s26 = scalar_select %p1139_p6, 1, 0 }
  0x10   : > { %p752_p9 = scmp.ge.s32.totalorder %s1049_s18, 1  ;;  %p141_p10 = scmp.lt.s32.totalorder %s1049_s18, 5 }
  0x11   : > { %p1146_p11 = por %p128_p7, %p35_p0  ;;  %p1150_p12 = por %p134_p8, %p41_p3 }
  0x12   : > { %p1154_p13 = pnand %p752_p9, %p141_p10  ;;  %s1051_s30 = smov [#allocation5]  }
  0x13   : > { %s1411_s27 = scalar_select %p1146_p11, 1, 0 }
  0x14   : > { %s1412_s28 = scalar_select %p1150_p12, 1, 0 }
  0x15   : > { %s1413_s29 = scalar_select %p1154_p13, 1, 0 }
  0x16   : > { %p865_p1 = pneg %p1154_p13  ;;  %s154_s5 = sshll.u32 %s1051_s30, 4  ;;  %s155_s5 = int_to_ptr.vmem [resolvable:$true] %s154_s5 }
  0x17   : > { %s1052_s6 = smov [#allocation7]   ;;  %s951_s11 = scalar_lea.hbm %s1400_s1, 64 }
  0x18   : > { %s164_s7 = sshll.u32 %s1052_s6, 4  ;;  %p1162_p0 = pnand %p865_p1, %p1404_p4  ;;  %s1166_s7 = int_to_ptr.vmem [resolvable:$true] %s164_s7 }
  0x19   : > { %p952_p2 = scmp.ne.s32.totalorder %s1400_s1, %s951_s11  ;;  %p958_p9 = scmp.lt.u32.totalorder %s951_s11, %s1400_s1 }
  0x1a   : > { %p953_p3 = pneg %p1162_p0 }
  0x1c   : > { %p954_p7 = pnand %p953_p3, %p952_p2 }
  0x1e   : > { %p955_p8 = pneg %p954_p7 }
  0x20   : > { %p960_p10 = pnand %p958_p9, %p955_p8 }
  0x22   : > { %963 = shalt.err (!%p960_p10)
}
  0x23   : > { %s964_s22 = scalar_lea.vmem %s155_s5, 64  ;;  %p972_p11 = scmp.lt.s32.totalorder %s155_s5, %s155_s5 }
  0x24   : > { %p965_p1 = scmp.ne.s32.totalorder %s155_s5, %s964_s22  ;;  %p973_p6 = scmp.lt.s32.totalorder %s964_s22, %s964_s22 }
  0x26   : > { %p967_p4 = pnand %p965_p1, %p953_p3  ;;  %p974_p13 = por %p973_p6, %p972_p11 }
  0x28   : > { %p968_p12 = pneg %p967_p4 }
  0x2a   : > { %p975_p5 = pnand %p974_p13, %p968_p12 }
  0x2c   : > { %978 = shalt.err (!%p975_p5)
}
  0x2d   : > { %868 = dma.hbm_to_vmem [thread:$0]  (!%p1162_p0), %s1400_s1, 64, %s155_s5, [#allocation6]  }
  0x2e   : > { %s979_s10 = scalar_lea.hbm %s1401_s2, 4096 }
  0x2f   : > { %p980_p4 = scmp.ne.s32.totalorder %s1401_s2, %s979_s10  ;;  %p986_p5 = scmp.lt.u32.totalorder %s979_s10, %s1401_s2 }
  0x31   : > { %p982_p6 = pnand %p980_p4, %p953_p3 }
  0x33   : > { %p983_p11 = pneg %p982_p6 }
  0x35   : > { %p988_p12 = pnand %p986_p5, %p983_p11 }
  0x37   : > { %991 = shalt.err (!%p988_p12)
}
  0x38   : > { %s992_s5 = scalar_lea.vmem %s1166_s7, 4096  ;;  %p1000_p8 = scmp.lt.s32.totalorder %s1166_s7, %s1166_s7 }
  0x39   : > { %p993_p13 = scmp.ne.s32.totalorder %s1166_s7, %s992_s5  ;;  %p1001_p9 = scmp.lt.s32.totalorder %s992_s5, %s992_s5 }
  0x3b   : > { %p995_p2 = pnand %p993_p13, %p953_p3  ;;  %p1002_p10 = por %p1001_p9, %p1000_p8 }
  0x3d   : > { %p996_p7 = pneg %p995_p2 }
  0x3f   : > { %p1003_p1 = pnand %p1002_p10, %p996_p7 }
  0x41   : > { %1006 = shalt.err (!%p1003_p1)
}
  0x42   : > { %s1053_s20 = smov 128   ;;  %s1054_s22 = smov 8  }
  0x43   : > { %871 = dma.hbm_to_vmem [thread:$0]  (!%p1162_p0), %s1401_s2, 4096, %s1166_s7, [#allocation6], %s1053_s20, %s1053_s20, %s1054_s22  }
  0x44   : > { %p755_p4 = scmp.ge.s32.totalorder %s1049_s18, 4 }
  0x46   : > { %177 = sbr.rel (%p755_p4) target bundleno = 92 (0x5c), region = 28 }
  0x4d   : > { %s181_s6 = sand.u32 1, %s1045_s17   ;;  %s772_s9 = sshll.u32 %s1049_s18, 8 }
  0x4e   : > { %s756_s10 = sshll.u32 %s181_s6, 6  ;;  %s191_s12 = scalar_lea.hbm %s1399_s0, %s772_s9 }
  0x4f   : > { %p1415_p3 = scmp.ne.s32.totalorder %s1409_s25, 0  ;;  %s185_s13 = scalar_lea.vmem [#allocation2], %s756_s10 }
  0x50   : > { %s204_s14 = sshll.u32 %s185_s13, 4  ;;  %s1055_s20 = smov 1024   ;;  %s205_s14 = int_to_ptr.vmem [resolvable:$true] %s204_s14 }
  0x51   : > { %s844_s7 = scalar_select %p1415_p3, [#allocation0], [#allocation13] }
  0x52   : > { %845 = sst [smem:[#allocation10]] (%p1415_p3), %s1055_s20  ;;  %s1056_s22 = smov 256  }
  0x53   : > { %s196_s5 = sld [smem:[%s844_s7]]   ;;  %s1057_s23 = smov 2  }
  0x54   : > { %846 = sst [smem:[#allocation10 + $0x1]] (%p1415_p3), %s1056_s22  ;;  %s1058_s30 = smov 128  }
  0x55   : > { %847 = sst [smem:[#allocation10 + $0x2]] (%p1415_p3), %s1057_s23  ;;  %s1059_s10 = smov 8  }
  0x56   : > { %848 = sst [smem:[#allocation10 + $0x3]] (%p1415_p3), %s1058_s30  ;;  %s182_s8 = scalar_lea.sflag [#allocation3], %s181_s6 }
  0x57   : > { %849 = sst [smem:[#allocation10 + $0x4]] (%p1415_p3), %s1058_s30  ;;  %s1060_s7 = smov [#allocation9]  }
  0x58   : > { %850 = sst [smem:[#allocation10 + $0x5]] (%p1415_p3), %s1059_s10 }
  0x59   : > { %s759_s9 = sshll.u32 %s196_s5, 26 }
  0x5a   : > { %s760_s11 = sadd.s32 134217728, %s759_s9 }
  0x5b   : > { %851 = dma.general (%p1415_p3), %s191_s12, 1024, %s205_s14, %s182_s8, %s1060_s7, [#allocation10], %s760_s11, 0  }
  0x5c PF: > { %p1416_p0 = scmp.ne.s32.totalorder %s1413_s29, 0 }
  0x5d   : > { %s1240_s13 = sand.u32 (!%p1416_p0), 1, %s1041_s16   ;;  %p1417_p6 = scmp.ne.s32.totalorder (!%p1416_p0), %s1410_s26, 0 }
  0x5e   : > { %229 = sbr.rel (%p1416_p0) target bundleno = 445 (0x1bd), region = 36  ;;  %s762_s5 = sshll.u32 (!%p1416_p0), %s1240_s13, 6 }
  0x5f   : > { %s232_s20 = scalar_lea.sflag (!%p1416_p0), [#allocation3], %s1240_s13  ;;  %s1246_s22 = scalar_lea.vmem (!%p1416_p0), [#allocation2], %s762_s5 }
  0x65   : > { %1024 = dma.done.wait (%p1417_p6), %s232_s20, 1024  }
  0x66   : > { %1026 = vsyncadd (%p1417_p6), %s232_s20, 4294966272  ;;  %p1418_p11 = scmp.eq.s32.totalorder %s1115_s19, 0 }
  0x68   : > { %1028 = dma.done.wait (%p1418_p11), [#allocation6], 4160   ;;  %p1419_p5 = pmov %p1418_p11 }
  0x69   : > { %v1257_v0 = vld [vmem:[%s1246_s22] sm:$0xff]  ;;  %v1260_v1 = vld [vmem:[%s1246_s22 + $0x10] sm:$0xff]  ;;  %v1265_v2 = vld [vmem:[%s1246_s22 + $0x8] sm:$0xff]  ;;  %s1343_s29 = scalar_lea.vmem [#allocation8], %s762_s5  ;;  %s617_s6 = scalar_lea.sflag [#allocation4], %s1240_s13 }
  0x6a   : > { %1030 = vsyncadd (%p1419_p5), [#allocation6], 4294963136  ;;  %455 = vadd.xlane.f32.xlu0 %v1257_v0  ;;  %459 = vadd.xlane.f32.xlu1 %v1260_v1  ;;  %v1268_v3 = vld [vmem:[%s1246_s22 + $0x18] sm:$0xff]  ;;  %v294_v4 = vld [vmem:[#allocation7 + $0x80] sm:$0xff] }
  0x6b   : > { %v295_v5 = vld [vmem:[#allocation7 + $0x88] sm:$0xff]  ;;  %v278_v6 = vld [vmem:[#allocation7] sm:$0xff]  ;;  %v296_v10 = vld [vmem:[#allocation7 + $0x90] sm:$0xff] }
  0x6c   : > { %v279_v7 = vld [vmem:[#allocation7 + $0x8] sm:$0xff]  ;;  %v808_v8 = vpack.c.bf16 %v295_v5, %v294_v4  ;;  %v297_v11 = vld [vmem:[#allocation7 + $0x98] sm:$0xff]  ;;  %v280_v15 = vld [vmem:[#allocation7 + $0x10] sm:$0xff] }
  0x6d   : > { %v810_v9 = vpack.c.bf16 %v279_v7, %v278_v6  ;;  %v812_v12 = vpack.c.bf16 %v297_v11, %v296_v10  ;;  %v1273_v13 = vld [vmem:[%s1246_s22 + $0x20] sm:$0xff]  ;;  %v1276_v14 = vld [vmem:[%s1246_s22 + $0x28] sm:$0xff]  ;;  %v1281_v19 = vld [vmem:[%s1246_s22 + $0x30] sm:$0xff] }
  0x6e   : > { %457 = vadd.xlane.f32.xlu0 %v1265_v2  ;;  %461 = vadd.xlane.f32.xlu1 %v1268_v3  ;;  %v281_v16 = vld [vmem:[#allocation7 + $0x18] sm:$0xff]  ;;  %v298_v17 = vld [vmem:[#allocation7 + $0xa0] sm:$0xff]  ;;  %v299_v18 = vld [vmem:[#allocation7 + $0xa8] sm:$0xff] }
  0x6f   : > { %809 = vmatprep.subr.bf16.mxu0 %v808_v8  ;;  %v1284_v20 = vld [vmem:[%s1246_s22 + $0x38] sm:$0xff]  ;;  %v814_v21 = vpack.c.bf16 %v281_v16, %v280_v15  ;;  %v816_v22 = vpack.c.bf16 %v299_v18, %v298_v17  ;;  %v270_v23 = vld [vmem:[#allocation5] sm:$0xf]  ;;  %v282_v25 = vld [vmem:[#allocation7 + $0x20] sm:$0xff] }
  0x70   : > { %811 = vmatpush3.bf16.xpose.msra.mxu0 %v810_v9  ;;  %v766_v24 = vmul.f32 -1.442695, %v270_v23  ;;  %v283_v26 = vld [vmem:[#allocation7 + $0x28] sm:$0xff]  ;;  %v300_v27 = vld [vmem:[#allocation7 + $0xb0] sm:$0xff]  ;;  %v301_v28 = vld [vmem:[#allocation7 + $0xb8] sm:$0xff] }
  0x71   : > { %813 = vmatprep.subr.bf16.mxu0 %v812_v12  ;;  %v818_v29 = vpack.c.bf16 %v283_v26, %v282_v25  ;;  %v820_v30 = vpack.c.bf16 %v301_v28, %v300_v27  ;;  %v284_v31 = vld [vmem:[#allocation7 + $0x30] sm:$0xff]  ;;  %v285_v32 = vld [vmem:[#allocation7 + $0x38] sm:$0xff]  ;;  %v302_v33 = vld [vmem:[#allocation7 + $0xc0] sm:$0xff] }
  0x72   : > { %463 = vadd.xlane.f32.xlu0 %v1273_v13  ;;  %465 = vadd.xlane.f32.xlu1 %v1276_v14  ;;  %931 = vpow2.f32 %v766_v24  ;;  %v303_v34 = vld [vmem:[#allocation7 + $0xc8] sm:$0xff]  ;;  %v822_v36 = vpack.c.bf16 %v285_v32, %v284_v31  ;;  %v286_v39 = vld [vmem:[#allocation7 + $0x40] sm:$0xff]  ;;  %v304_v41 = vld [vmem:[#allocation7 + $0xd0] sm:$0xff]  ;;  %v312_v32 = vlaneseq }
  0x73   : > { %v824_v38 = vpack.c.bf16 %v303_v34, %v302_v33  ;;  %v287_v40 = vld [vmem:[#allocation7 + $0x48] sm:$0xff]  ;;  %v305_v42 = vld [vmem:[#allocation7 + $0xd8] sm:$0xff]  ;;  %v288_v46 = vld [vmem:[#allocation7 + $0x50] sm:$0xff]  ;;  %v1061_v34 = vmov 1966171168  }
  0x74   : > { %v826_v43 = vpack.c.bf16 %v287_v40, %v286_v39  ;;  %v828_v44 = vpack.c.bf16 %v305_v42, %v304_v41  ;;  %v289_v47 = vld [vmem:[#allocation7 + $0x58] sm:$0xff]  ;;  %v306_v49 = vld [vmem:[#allocation7 + $0xe0] sm:$0xff]  ;;  %v307_v50 = vld [vmem:[#allocation7 + $0xe8] sm:$0xff] }
  0x75   : > { %v830_v51 = vpack.c.bf16 %v289_v47, %v288_v46  ;;  %v832_v52 = vpack.c.bf16 %v307_v50, %v306_v49  ;;  %v290_v53 = vld [vmem:[#allocation7 + $0x60] sm:$0xff]  ;;  %v291_v54 = vld [vmem:[#allocation7 + $0x68] sm:$0xff]  ;;  %v308_v55 = vld [vmem:[#allocation7 + $0xf0] sm:$0xff] }
  0x76   : > { %467 = vadd.xlane.f32.xlu0 %v1281_v19  ;;  %469 = vadd.xlane.f32.xlu1 %v1284_v20  ;;  %v309_v56 = vld [vmem:[#allocation7 + $0xf8] sm:$0xff]  ;;  %v834_v57 = vpack.c.bf16 %v291_v54, %v290_v53  ;;  %v292_v59 = vld [vmem:[#allocation7 + $0x70] sm:$0xff] }
  0x77   : > { %v836_v58 = vpack.c.bf16 %v309_v56, %v308_v55  ;;  %v293_v60 = vld [vmem:[#allocation7 + $0x78] sm:$0xff] }
  0x78   : > { %815 = vmatpush3.bf16.xpose.msra.mxu0 %v814_v21  ;;  %v838_v61 = vpack.c.bf16 %v293_v60, %v292_v59 }
  0x79   : > { %817 = vmatprep.subr.bf16.mxu0 %v816_v22 }
  0x7c   : > { %v932_v35 = vpop.eup %931 }
  0x7d   : > { %v274_v37 = vadd.f32 1.0, %v932_v35  ;;  %v395_v35 = vunpack.c.l.s4 %v1061_v34 }
  0x7f   : > { %933 = vrcp.f32 %v274_v37  ;;  %v396_v39 = vunpack.c.0.s8 %v395_v35 }
  0x80   : > { %819 = vmatpush3.bf16.xpose.msra.mxu0 %v818_v29 }
  0x81   : > { %821 = vmatprep.subr.bf16.mxu0 %v820_v30 }
  0x88   : > { %823 = vmatpush3.bf16.xpose.msra.mxu0 %v822_v36 }
  0x89   : > { %825 = vmatprep.subr.bf16.mxu0 %v824_v38  ;;  %v934_v45 = vpop.eup %933 }
  0x8a   : > { %v277_v48 = vmul.f32 %v934_v45, %v270_v23 }
  0x8c   : > { %806 = vmatprep.mubr.f32.mxu0 %v277_v48 }
  0x90   : > { %827 = vmatpush3.bf16.xpose.msra.mxu0 %v826_v43 }
  0x91   : > { %829 = vmatprep.subr.bf16.mxu0 %v828_v44 }
  0x98   : > { %831 = vmatpush3.bf16.xpose.msra.mxu0 %v830_v51 }
  0x99   : > { %833 = vmatprep.subr.bf16.mxu0 %v832_v52 }
  0xa0   : > { %835 = vmatpush3.bf16.xpose.msra.mxu0 %v834_v57 }
  0xa1   : > { %837 = vmatprep.subr.bf16.mxu0 %v836_v58 }
  0xa8   : > { %839 = vmatpush3.bf16.xpose.msra.mxu0 %v838_v61 }
  0xaf   : > { %807 = vmatmul.mubr.f32.vlgmr.msra.gmra.mrb[0].mxu0 %v277_v48 }
  0xf7   : > { %v456_v62 = vpop.xlane.xlu0 %455  ;;  %v460_v63 = vpop.xlane.xlu1 %459 }
  0xf8   : > { %v472_v4 = vmul.f32 0.0078125, %v456_v62  ;;  %v474_v5 = vmul.f32 0.0078125, %v460_v63 }
  0xfa   : > { %v1289_v6 = vsub.f32 %v1257_v0, %v472_v4  ;;  %v1292_v7 = vsub.f32 %v1260_v1, %v474_v5 }
  0xfb   : > { %v458_v8 = vpop.xlane.xlu0 %457  ;;  %v462_v9 = vpop.xlane.xlu1 %461 }
  0xfc   : > { %v473_v10 = vmul.f32 0.0078125, %v458_v8  ;;  %v488_v11 = vmul.f32 %v1289_v6, %v1289_v6  ;;  %v475_v12 = vmul.f32 0.0078125, %v462_v9  ;;  %v490_v0 = vmul.f32 %v1292_v7, %v1292_v7 }
  0xfe   : > { %v1297_v15 = vsub.f32 %v1265_v2, %v473_v10  ;;  %496 = vadd.xlane.f32.xlu0 %v488_v11  ;;  %v1300_v16 = vsub.f32 %v1268_v3, %v475_v12 }
  0xff   : > { %v464_v17 = vpop.xlane.xlu0 %463  ;;  %v466_v1 = vpop.xlane.xlu1 %465 }
 0x100   : > { %v476_v18 = vmul.f32 0.0078125, %v464_v17  ;;  %v489_v21 = vmul.f32 %v1297_v15, %v1297_v15  ;;  %v477_v22 = vmul.f32 0.0078125, %v466_v1  ;;  %v491_v3 = vmul.f32 %v1300_v16, %v1300_v16 }
 0x102   : > { %v1307_v23 = vsub.f32 %v1273_v13, %v476_v18  ;;  %500 = vadd.xlane.f32.xlu0 %v490_v0  ;;  %498 = vadd.xlane.f32.xlu1 %v489_v21  ;;  %v1310_v2 = vsub.f32 %v1276_v14, %v477_v22 }
 0x103   : > { %v468_v24 = vpop.xlane.xlu0 %467  ;;  %v470_v25 = vpop.xlane.xlu1 %469 }
 0x104   : > { %v478_v26 = vmul.f32 0.0078125, %v468_v24  ;;  %v492_v27 = vmul.f32 %v1307_v23, %v1307_v23  ;;  %v479_v28 = vmul.f32 0.0078125, %v470_v25  ;;  %v493_v14 = vmul.f32 %v1310_v2, %v1310_v2 }
 0x106   : > { %v1317_v29 = vsub.f32 %v1281_v19, %v478_v26  ;;  %502 = vadd.xlane.f32.xlu1 %v491_v3  ;;  %504 = vadd.xlane.f32.xlu0 %v492_v27  ;;  %v1320_v13 = vsub.f32 %v1284_v20, %v479_v28  ;;  %v313_v19 = vshrl.u32 %v312_v32, 7  ;;  %v310_v20 = vld [vmem:[%s1402_s3] sm:$0x3] }
 0x108   : > { %v494_v30 = vmul.f32 %v1317_v29, %v1317_v29  ;;  %v495_v31 = vmul.f32 %v1320_v13, %v1320_v13  ;;  %v1328_v33 = vsub.s32 0, %v313_v19  ;;  %v318_v40 = vsub.s32 1, %v313_v19 }
 0x109   : > { %v399_v42 = vsub.s32 %v396_v39, %v313_v19 }
 0x10a   : > { %506 = vadd.xlane.f32.xlu1 %v493_v14  ;;  %508 = vadd.xlane.f32.xlu0 %v494_v30  ;;  %v315_v38 = vrot.slane %v310_v20, %v1328_v33  ;;  %v319_v44 = vrot.slane %v310_v20, %v318_v40 }
 0x10e   : > { %510 = vadd.xlane.f32.xlu1 %v495_v31 }
 0x182   : > { %v388_v36 = vpop.f32.mrb[0].mxu0 }
 0x183   : > { %v390_v37 = vpop.f32.mrb[1].mxu0  ;;  %v389_v41 = vadd.f32 %v388_v36, %v315_v38 }
 0x184   : > { %v391_v50 = vadd.f32 %v390_v37, %v319_v44 }
 0x185   : > { %v400_v46 = vrot.slane %v389_v41, %v399_v42 }
 0x186   : > { %v429_v59 = vrot.slane %v391_v50, %v399_v42 }
 0x187   : > { %v408_v53 = vrot.slane %v400_v46, %v399_v42  ;;  %v401_v56 = vcombine.high %v400_v46, %v400_v46 }
 0x188   : > { %v437_v8 = vrot.slane %v429_v59, %v399_v42  ;;  %v430_v11 = vcombine.high %v429_v59, %v429_v59 }
 0x189   : > { %v544_v62 = vadd.f32 1.0, %v408_v53  ;;  %v415_v63 = vrot.slane %v401_v56, %v399_v42  ;;  %v416_v18 = vcombine.high %v408_v53, %v408_v53 }
 0x18a   : > { %v583_v25 = vrot.slane %v437_v8, %v1328_v33  ;;  %v444_v27 = vrot.slane %v430_v11, %v399_v42  ;;  %v445_v37 = vcombine.high %v437_v8, %v437_v8 }
 0x18b   : > { %v497_v43 = vpop.xlane.xlu0 %496  ;;  %v555_v17 = vrot.slane %v544_v62, %v1328_v33  ;;  %v545_v21 = vadd.f32 1.0, %v415_v63  ;;  %v417_v31 = vcombine.high %v415_v63, %v415_v63  ;;  %v546_v32 = vadd.f32 1.0, %v416_v18 }
 0x18c   : > { %v512_v45 = vmul.f32 0.0078125, %v497_v43  ;;  %v587_v38 = vrot.slane %v444_v27, %v1328_v33  ;;  %v446_v46 = vcombine.high %v444_v27, %v444_v27 }
 0x18d   : > { %v559_v19 = vrot.slane %v545_v21, %v1328_v33  ;;  %v547_v41 = vadd.f32 1.0, %v417_v31  ;;  %v563_v42 = vrot.slane %v546_v32, %v1328_v33 }
 0x18e   : > { %v520_v47 = vadd.f32 1e-05, %v512_v45 }
 0x18f   : > { %v499_v48 = vpop.xlane.xlu1 %498  ;;  %v501_v49 = vpop.xlane.xlu0 %500 }
 0x190   : > { %935 = vrsqrt.f32 %v520_v47  ;;  %v513_v51 = vmul.f32 0.0078125, %v499_v48  ;;  %v514_v52 = vmul.f32 0.0078125, %v501_v49  ;;  %v591_v47 = vrot.slane %v445_v37, %v1328_v33 }
 0x192   : > { %v521_v54 = vadd.f32 1e-05, %v513_v51  ;;  %v522_v55 = vadd.f32 1e-05, %v514_v52  ;;  %v567_v51 = vrot.slane %v547_v41, %v1328_v33 }
 0x193   : > { %v503_v57 = vpop.xlane.xlu1 %502  ;;  %v505_v58 = vpop.xlane.xlu0 %504 }
 0x194   : > { %937 = vrsqrt.f32 %v521_v54  ;;  %v515_v60 = vmul.f32 0.0078125, %v503_v57  ;;  %v516_v61 = vmul.f32 0.0078125, %v505_v58 }
 0x195   : > { %939 = vrsqrt.f32 %v522_v55 }
 0x196   : > { %v523_v4 = vadd.f32 1e-05, %v515_v60  ;;  %v524_v5 = vadd.f32 1e-05, %v516_v61 }
 0x197   : > { %v507_v9 = vpop.xlane.xlu1 %506  ;;  %v509_v10 = vpop.xlane.xlu0 %508 }
 0x198   : > { %941 = vrsqrt.f32 %v523_v4  ;;  %v517_v12 = vmul.f32 0.0078125, %v507_v9  ;;  %v518_v0 = vmul.f32 0.0078125, %v509_v10 }
 0x199   : > { %943 = vrsqrt.f32 %v524_v5 }
 0x19a   : > { %v936_v1 = vpop.eup %935  ;;  %v525_v22 = vadd.f32 1e-05, %v517_v12  ;;  %v526_v3 = vadd.f32 1e-05, %v518_v0 }
 0x19b   : > { %v536_v24 = vmul.f32 %v936_v1, %v1289_v6  ;;  %v511_v26 = vpop.xlane.xlu1 %510 }
 0x19c   : > { %945 = vrsqrt.f32 %v525_v22  ;;  %v519_v28 = vmul.f32 0.0078125, %v511_v26 }
 0x19d   : > { %v572_v14 = vmul.f32 %v555_v17, %v536_v24  ;;  %947 = vrsqrt.f32 %v526_v3 }
 0x19e   : > { %v938_v30 = vpop.eup %937  ;;  %v527_v34 = vadd.f32 1e-05, %v519_v28 }
 0x19f   : > { %v940_v35 = vpop.eup %939  ;;  %v537_v20 = vmul.f32 %v938_v30, %v1297_v15  ;;  %v600_v36 = vadd.f32 %v583_v25, %v572_v14 }
 0x1a0   : > { %v538_v6 = vmul.f32 %v940_v35, %v1292_v7  ;;  %949 = vrsqrt.f32 %v527_v34 }
 0x1a1   : > { %v573_v39 = vmul.f32 %v555_v17, %v537_v20  ;;  %608 = vst [vmem:[%s1343_s29] sm:$0xff] %v600_v36 }
 0x1a2   : > { %v942_v40 = vpop.eup %941  ;;  %v574_v15 = vmul.f32 %v559_v19, %v538_v6 }
 0x1a3   : > { %v944_v43 = vpop.eup %943  ;;  %v539_v7 = vmul.f32 %v942_v40, %v1300_v16  ;;  %v601_v44 = vadd.f32 %v583_v25, %v573_v39 }
 0x1a4   : > { %v540_v45 = vmul.f32 %v944_v43, %v1307_v23  ;;  %v602_v48 = vadd.f32 %v587_v38, %v574_v15  ;;  %v595_v23 = vrot.slane %v446_v46, %v1328_v33 }
 0x1a5   : > { %v575_v49 = vmul.f32 %v559_v19, %v539_v7  ;;  %609 = vst [vmem:[%s1343_s29 + $0x8] sm:$0xff] %v601_v44 }
 0x1a6   : > { %v946_v50 = vpop.eup %945  ;;  %v576_v52 = vmul.f32 %v563_v42, %v540_v45  ;;  %610 = vst [vmem:[%s1343_s29 + $0x10] sm:$0xff] %v602_v48 }
 0x1a7   : > { %v948_v53 = vpop.eup %947  ;;  %v603_v16 = vadd.f32 %v587_v38, %v575_v49  ;;  %v541_v54 = vmul.f32 %v946_v50, %v1310_v2 }
 0x1a8   : > { %v604_v55 = vadd.f32 %v591_v47, %v576_v52  ;;  %v542_v56 = vmul.f32 %v948_v53, %v1317_v29 }
 0x1a9   : > { %611 = vst [vmem:[%s1343_s29 + $0x18] sm:$0xff] %v603_v16  ;;  %v577_v57 = vmul.f32 %v563_v42, %v541_v54 }
 0x1aa   : > { %v950_v58 = vpop.eup %949  ;;  %612 = vst [vmem:[%s1343_s29 + $0x20] sm:$0xff] %v604_v55  ;;  %v578_v59 = vmul.f32 %v567_v51, %v542_v56 }
 0x1ab   : > { %v605_v60 = vadd.f32 %v591_v47, %v577_v57  ;;  %v543_v61 = vmul.f32 %v950_v58, %v1320_v13 }
 0x1ac   : > { %v606_v62 = vadd.f32 %v595_v23, %v578_v59 }
 0x1ad   : > { %613 = vst [vmem:[%s1343_s29 + $0x28] sm:$0xff] %v605_v60  ;;  %v579_v63 = vmul.f32 %v567_v51, %v543_v61 }
 0x1ae   : > { %614 = vst [vmem:[%s1343_s29 + $0x30] sm:$0xff] %v606_v62 }
 0x1af   : > { %v607_v2 = vadd.f32 %v595_v23, %v579_v63 }
 0x1b1   : > { %615 = vst [vmem:[%s1343_s29 + $0x38] sm:$0xff] %v607_v2 }
 0x1b2   : > { %s773_s12 = sshll.u32 %s1115_s19, 8  ;;  %s646_s14 = sshll.u32 %s1343_s29, 4  ;;  %s647_s14 = int_to_ptr.vmem [resolvable:$true] %s646_s14 }
 0x1b3   : > { %s629_s9 = scalar_lea.hbm %s1403_s4, %s773_s12  ;;  %s1062_s10 = smov 256  }
 0x1b4   : > { %p1420_p12 = scmp.ne.s32.totalorder %s1411_s27, 0  ;;  %s1063_s11 = smov 1024  }
 0x1b5   : > { %s1064_s8 = smov 2   ;;  %s1065_s7 = smov 128  }
 0x1b6   : > { %857 = sst [smem:[#allocation12]] (%p1420_p12), %s1062_s10  ;;  %s1066_s19 = smov 8  }
 0x1b7   : > { %858 = sst [smem:[#allocation12 + $0x1]] (%p1420_p12), %s1063_s11  ;;  %s1067_s13 = smov [#allocation11]  }
 0x1b8   : > { %859 = sst [smem:[#allocation12 + $0x2]] (%p1420_p12), %s1064_s8  ;;  %s1068_s5 = smov 0  }
 0x1b9   : > { %860 = sst [smem:[#allocation12 + $0x3]] (%p1420_p12), %s1065_s7 }
 0x1ba   : > { %861 = sst [smem:[#allocation12 + $0x4]] (%p1420_p12), %s1065_s7 }
 0x1bb   : > { %862 = sst [smem:[#allocation12 + $0x5]] (%p1420_p12), %s1066_s19 }
 0x1bc   : > { %863 = dma.general (%p1420_p12), %s647_s14, 1024, %s629_s9, %s617_s6, %s1067_s13, [#allocation12], %s1068_s5, 0  }
 0x1bd PF: > { %p880_p13 = scmp.ge.s32.totalorder %s1049_s18, 2  ;;  %s674_s20 = sand.u32 1, %s1037_s15  }
 0x1be   : > { %p1421_p2 = scmp.ne.s32.totalorder %s1412_s28, 0  ;;  %s675_s22 = scalar_lea.sflag [#allocation4], %s674_s20 }
 0x1c0   : > { %p873_p7 = pnand %p880_p13, %p1421_p2 }
 0x1c2   : > { %1032 = dma.done.wait (!%p873_p7), %s675_s22, 1024  }
 0x1c3   : > { %1034 = vsyncadd (!%p873_p7), %s675_s22, 4294966272  ;;  %p18_p8 = scmp.ge.s32.totalorder %s1119_s21, 6   ;;  %s1422_s15 = smov %s1041_s16 }
 0x1c4   : > { %s1423_s16 = smov %s1045_s17  ;;  %s1424_s17 = smov %s1131_s24 }
 0x1c5   : > { %s1425_s18 = smov %s1119_s21  ;;  %20 = sbr.rel (!%p18_p8) target bundleno = 6 (0x6), region = 99 }
 0x1cc   :  { %680 = vsyncpa [#allocation3], 1 }
 0x1cd   :  { %682 = vsyncpa [#allocation3 + $0x1], 1 }
 0x1ce   :  { %683 = vsyncpa [#allocation6], 1 }
 0x1cf   :  { %684 = vsyncpa [#allocation4], 1 }
 0x1d0   :  { %686 = vsyncpa [#allocation4 + $0x1], 1 }

</bundles_post_ra>
